<compile_context>
chip_gen: v7x
topology: tpu7x:2x2x1
jax: 0.10.0
libtpu: 0.0.40
codegen_flags: <defaults>
</compile_context>

<pallas_src>
import jax
import jax.numpy as jnp
from jax.experimental import pallas as pl
from jax.experimental.pallas import tpu as pltpu


def _masked_l1_kernel(pred_ref, mask_ref, target_ref, loss_ref):
    # pred_ref / mask_ref / target_ref: (B, K*C) f32, VMEM, lane-dense.
    # loss_ref: (1,) f32, SMEM (scalar output).
    m = mask_ref[...]
    diff = (pred_ref[...] - target_ref[...]) * m          # fused mask multiply
    abs_sum = jnp.sum(jnp.abs(diff))                       # one vectorized reduce
    mask_sum = jnp.sum(m)
    loss_ref[0] = abs_sum / (mask_sum + jnp.float32(1e-4))


def reg_weighted_l1_loss(output, mask, ind, target):
    """output: (B,C,H,W) f32; mask/target: (B,K,C); ind: (B,K) int -> scalar loss."""
    B, C, H, W = output.shape
    K = ind.shape[1]

    # _tranpose_and_gather_feat without materializing NHWC:
    #   feat_nhwc[b, hw, c] == output[b, c, hw]  (hw = h*W + w)
    # so gather hw-columns from the free NCHW reshape and transpose the tiny result.
    feat_chw = output.reshape(B, C, H * W)                               # free reshape
    idx = ind[:, None, :].astype(jnp.int32)                              # (B, 1, K)
    pred = jnp.transpose(jnp.take_along_axis(feat_chw, idx, axis=2),     # (B, C, K)
                         (0, 2, 1))                                      # (B, K, C)

    # Lane-dense (B, K*C) slabs for the kernel.
    pred = pred.astype(jnp.float32).reshape(B, K * C)
    mask = mask.astype(jnp.float32).reshape(B, K * C)
    target = target.astype(jnp.float32).reshape(B, K * C)

    loss = pl.pallas_call(
        _masked_l1_kernel,
        out_shape=jax.ShapeDtypeStruct((1,), jnp.float32),
        in_specs=[
            pl.BlockSpec(memory_space=pltpu.MemorySpace.VMEM),   # pred  (B, K*C)
            pl.BlockSpec(memory_space=pltpu.MemorySpace.VMEM),   # mask  (B, K*C)
            pl.BlockSpec(memory_space=pltpu.MemorySpace.VMEM),   # target(B, K*C)
        ],
        out_specs=pl.BlockSpec(memory_space=pltpu.MemorySpace.SMEM),
    )(pred, mask, target)
    return loss[0]


def _reference_loss(output, mask, ind, target):
    # Exact mirror of the PyTorch forward (NHWC transpose + gather path).
    B, C, H, W = output.shape
    feat = jnp.transpose(output, (0, 2, 3, 1)).reshape(B, H * W, C)
    pred = jnp.take_along_axis(feat, ind[:, :, None].astype(jnp.int32), axis=1)
    mask = mask.astype(jnp.float32)
    s = jnp.sum(jnp.abs(pred * mask - target * mask))
    return s / (jnp.sum(mask) + 0.0001)


if __name__ == "__main__":
    B, C, H, W, K = 2, 4, 16, 16, 8

    key = jax.random.PRNGKey(0)
    k_out, k_ind, k_mask, k_tgt = jax.random.split(key, 4)

    output = jax.random.normal(k_out, (B, C, H, W), dtype=jnp.float32)
    ind = jax.random.randint(k_ind, (B, K), 0, H * W, dtype=jnp.int32)
    mask = (jax.random.uniform(k_mask, (B, K, C)) < 0.7).astype(jnp.float32)
    target = jax.random.normal(k_tgt, (B, K, C), dtype=jnp.float32)

    loss_fn = jax.jit(reg_weighted_l1_loss)
    loss = jax.block_until_ready(loss_fn(output, mask, ind, target))
    ref = jax.block_until_ready(_reference_loss(output, mask, ind, target))

    assert jnp.allclose(loss, ref, rtol=1e-5, atol=1e-5), (loss, ref)
    print("KERNEL_OK")
</pallas_src>

<mosaic_0001>
module attributes {stable_mosaic.version = 11 : i64} {
  func.func @_masked_l1_kernel(%arg0: memref<2x32xf32, #tpu.memory_space<vmem>>, %arg1: memref<2x32xf32, #tpu.memory_space<vmem>>, %arg2: memref<2x32xf32, #tpu.memory_space<vmem>>, %arg3: memref<1xf32, #tpu.memory_space<smem>>) attributes {dimension_semantics = [], scalar_prefetch = 0 : i64, scratch_operands = 0 : i64, tpu.core_type = #tpu.core_type<tc>} {
    %c0 = arith.constant 0 : index
    %c0_0 = arith.constant 0 : index
    %0 = vector.load %arg1[%c0, %c0_0] : memref<2x32xf32, #tpu.memory_space<vmem>>, vector<2x32xf32>
    %c0_1 = arith.constant 0 : index
    %c0_2 = arith.constant 0 : index
    %1 = vector.load %arg0[%c0_1, %c0_2] : memref<2x32xf32, #tpu.memory_space<vmem>>, vector<2x32xf32>
    %c0_3 = arith.constant 0 : index
    %c0_4 = arith.constant 0 : index
    %2 = vector.load %arg2[%c0_3, %c0_4] : memref<2x32xf32, #tpu.memory_space<vmem>>, vector<2x32xf32>
    %3 = arith.subf %1, %2 : vector<2x32xf32>
    %4 = arith.mulf %3, %0 : vector<2x32xf32>
    %5 = math.absf %4 : vector<2x32xf32>
    %6 = vector.shape_cast %5 : vector<2x32xf32> to vector<1x2x32xf32>
    %cst = arith.constant dense<0.000000e+00> : vector<1xf32>
    %7 = vector.multi_reduction <add>, %6, %cst [1, 2] : vector<1x2x32xf32> to vector<1xf32>
    %8 = vector.shape_cast %7 : vector<1xf32> to vector<1x1x1xf32>
    %9 = vector.extract %8[0, 0, 0] : f32 from vector<1x1x1xf32>
    %10 = vector.shape_cast %0 : vector<2x32xf32> to vector<1x2x32xf32>
    %cst_5 = arith.constant dense<0.000000e+00> : vector<1xf32>
    %11 = vector.multi_reduction <add>, %10, %cst_5 [1, 2] : vector<1x2x32xf32> to vector<1xf32>
    %12 = vector.shape_cast %11 : vector<1xf32> to vector<1x1x1xf32>
    %13 = vector.extract %12[0, 0, 0] : f32 from vector<1x1x1xf32>
    %cst_6 = arith.constant 9.99999974E-5 : f32
    %14 = arith.addf %13, %cst_6 : f32
    %15 = arith.divf %9, %14 : f32
    %c0_7 = arith.constant 0 : index
    %16 = memref.load %arg3[%c0_7] : memref<1xf32, #tpu.memory_space<smem>>
    memref.store %15, %arg3[%c0_7] : memref<1xf32, #tpu.memory_space<smem>>
    return
  }
}

</mosaic_0001>

<bundles_post_ra>
// kernel: reg_weighted_l1_loss.1
= control target key start
LH: loop header
LB: loop body
LE: loop exit
PB: predicated region body
PF: predicated region fallthrough
CT: control target
= control target key end

     0   :  { %s125_s0 = inlined_call_operand.vmem [shape: f32[2,32], index: 0, kind: input, shape index: {}]   ;;  %s126_s1 = inlined_call_operand.vmem [shape: f32[2,32], index: 1, kind: input, shape index: {}]   ;;  %s127_s2 = inlined_call_operand.vmem [shape: f32[2,32], index: 2, kind: input, shape index: {}]   ;;  %s128_s3 = inlined_call_operand.hbm [shape: f32[1], index: 3, kind: output, shape index: {}]  }
   0x1   :  { %v15_v0 = vld [vmem:[%s126_s1] sm:$0x3] }
   0x2   :  { %v16_v1 = vld [vmem:[%s125_s0] sm:$0x3] }
   0x3   :  { %v17_v2 = vld [vmem:[%s127_s2] sm:$0x3] }
   0x4   :  { %v18_v3 = vsub.f32 %v16_v1, %v17_v2 }
   0x5   :  { %8 = vsyncpa [#allocation3], 0  ;;  %vm21_vm0 = vcmask 254976   ;;  %s71_s22 = scalar_lea.hbm %s128_s3, 16 }
   0x6   :  { %v19_v4 = vmul.f32 %v18_v3, %v15_v0  ;;  %v32_v7 = vsel %vm21_vm0, %v15_v0, 0.0  ;;  %p72_p0 = scmp.ne.s32.totalorder %s128_s3, %s71_s22  ;;  %p75_p1 = scmp.lt.u32.totalorder %s71_s22, %s128_s3 }
   0x8   :  { %v20_v5 = vand.u32 2147483647, %v19_v4  ;;  %p77_p2 = pnand %p75_p1, %p72_p0 }
   0xa   :  { %v22_v6 = vsel %vm21_vm0, %v20_v5, 0.0 }
   0xb   :  { %23 = vadd.xlane.f32.xlu0 %v22_v6 }
   0xf   :  { %33 = vadd.xlane.f32.xlu0 %v32_v7 }
  0x98   :  { %v24_v8 = vpop.xlane.xlu0 %23 }
  0x99   :  { %v25_v9 = vrot.slane %v24_v8, 4 }
  0x9b   :  { %v26_v10 = vadd.f32 %v25_v9, %v24_v8 }
  0x9c   :  { %v34_v11 = vpop.xlane.xlu0 %33 }
  0x9d   :  { %v27_v12 = vrot.slane %v26_v10, 2  ;;  %v35_v13 = vrot.slane %v34_v11, 4 }
  0x9f   :  { %v36_v14 = vadd.f32 %v35_v13, %v34_v11  ;;  %v28_v15 = vadd.f32 %v27_v12, %v26_v10 }
  0xa1   :  { %v37_v16 = vrot.slane %v36_v14, 2  ;;  %v29_v17 = vrot.slane %v28_v15, 1 }
  0xa3   :  { %v38_v18 = vadd.f32 %v37_v16, %v36_v14  ;;  %v30_v19 = vadd.f32 %v29_v17, %v28_v15 }
  0xa5   :  { %62 = vpush %v30_v19  ;;  %v39_v20 = vrot.slane %v38_v18, 1 }
  0xa7   :  { %v40_v21 = vadd.f32 %v39_v20, %v38_v18 }
  0xa9   :  { %64 = vpush %v40_v21 }
  0xd6   :  { %s63_s0 = spop %62 }
  0xda   :  { %s65_s1 = spop %64 }
  0xdb   :  { %s42_s2 = sadd.f32 0.0001, %s65_s1 }
  0xdd   :  { %v43_v22 = vstv %s42_s2 }
  0xde   :  { %69 = vrcp.f32 %v43_v22 }
  0xe8   :  { %v70_v23 = vpop.eup %69 }
  0xe9   :  { %66 = vpush %v70_v23 }
 0x11a   :  { %s67_s18 = spop %66 }
 0x11b   :  { %s46_s19 = smul.f32 %s67_s18, %s63_s0 }
 0x11d   :  { %48 = sst [smem:[#allocation2]] %s46_s19 }
 0x11e   :  { %80 = shalt.err (!%p77_p2)
}
 0x11f   :  { %s83_s27 = smov [#allocation2]  }
 0x120   :  { %56 = dma.smem_to_hbm %s83_s27, 16, %s128_s3, [#allocation3]  }
 0x121   :  { %81 = dma.done.wait [#allocation3], 16  }
 0x122   :  { %82 = vsyncadd [#allocation3], 4294967280 }
 0x123   :  { %60 = sfence }
 0x124   :  { %61 = vsyncpa [#allocation3], 1 }

</bundles_post_ra>
